<compile_context>
chip_gen: v5e
topology: v5e:2x2
jax: 0.10.0
libtpu: 0.0.40
codegen_flags: <defaults>
</compile_context>

<pallas_src>
import jax
import jax.numpy as jnp
from jax.experimental import pallas as pl
from jax.experimental.pallas import tpu as pltpu

_LANE = 128


def dqn_kernel(xt_ref, w1_ref, b1_ref, w2_ref, b2_ref, w3_ref, b3_ref, ot_ref):
    xt = xt_ref[...]                                                # (state_dim, tb)

    # Layer 1: Linear(state_dim, 64) + ReLU  (f32 accumulation on the MXU)
    h1 = jnp.dot(w1_ref[...], xt, preferred_element_type=jnp.float32)
    h1 = jnp.maximum(h1 + b1_ref[...], 0.0)                        # (64, tb)

    # Layer 2: Linear(64, 32) + ReLU
    h2 = jnp.dot(w2_ref[...], h1, preferred_element_type=jnp.float32)
    h2 = jnp.maximum(h2 + b2_ref[...], 0.0)                        # (32, tb)

    # Layer 3: Linear(32, action_dim)  (no activation); lane-dense packed store
    out = jnp.dot(w3_ref[...], h2, preferred_element_type=jnp.float32)
    ot_ref[...] = (out + b3_ref[...]).astype(ot_ref.dtype)         # (action_dim, tb)


def dqn_forward(x, params, *, tile_b=4096, core_parallel=False):
    """Pallas forward pass.

    x: (B, state_dim) f32.  params: PyTorch-layout (W:(out,in), b:(out,1)).
    Returns (B, action_dim) f32.
    """
    w1, b1, w2, b2, w3, b3 = params
    B, state_dim = x.shape
    action_dim = w3.shape[0]

    # Feature-major view: batch on the lane (minor) axis.  Tiny op (B*S*4 bytes).
    xt = x.T                                                        # (state_dim, B)

    # ---- batch tiling (batch is the lane dim) --------------------------------
    if B <= tile_b:
        tb = B                      # single step; block == full array, no (8,128) rule
    else:
        tb = max(_LANE, (tile_b // _LANE) * _LANE)   # lane-dim tile: multiple of 128
    grid = (pl.cdiv(B, tb),)        # ragged last tile handled by masked store

    def const_spec(a):
        # full-array block, same block every step -> stays VMEM-resident
        return pl.BlockSpec(a.shape, lambda i: (0,) * a.ndim)

    weight_bytes = sum(int(a.size) * a.dtype.itemsize for a in (w1, b1, w2, b2, w3, b3))
    cost = pl.CostEstimate(
        flops=2 * B * (state_dim * 64 + 64 * 32 + 32 * action_dim),
        transcendentals=0,
        bytes_accessed=(B * state_dim + B * action_dim) * 4 + weight_bytes,
    )

    # v7x: set core_parallel=True to shard the batch grid across the 2 TCs.
    semantics = (pltpu.CORE_PARALLEL,) if core_parallel else ("parallel",)

    out_t = pl.pallas_call(
        dqn_kernel,
        out_shape=jax.ShapeDtypeStruct((action_dim, B), jnp.float32),
        grid_spec=pltpu.PrefetchScalarGridSpec(
            num_scalar_prefetch=0,
            grid=grid,
            in_specs=[
                pl.BlockSpec((state_dim, tb), lambda i: (0, i)),   # x^T tile
                const_spec(w1), const_spec(b1),
                const_spec(w2), const_spec(b2),
                const_spec(w3), const_spec(b3),
            ],
            out_specs=pl.BlockSpec((action_dim, tb), lambda i: (0, i)),
        ),
        compiler_params=pltpu.CompilerParams(dimension_semantics=semantics),
        cost_estimate=cost,
    )(xt, w1, b1, w2, b2, w3, b3)

    # Back to (B, action_dim); cheap (B*action_dim*4 bytes), no zero padding.
    return out_t.T


def init_params(key, state_dim, action_dim):
    """Deterministic init; PyTorch nn.Linear layout: W (out,in), b (out,1)."""
    ks = jax.random.split(key, 6)

    def linear(kw, kb, fan_in, fan_out):
        bound = 1.0 / (float(fan_in) ** 0.5)
        w = jax.random.uniform(kw, (fan_out, fan_in), jnp.float32, -bound, bound)
        b = jax.random.uniform(kb, (fan_out, 1), jnp.float32, -bound, bound)
        return w, b

    w1, b1 = linear(ks[0], ks[1], state_dim, 64)
    w2, b2 = linear(ks[2], ks[3], 64, 32)
    w3, b3 = linear(ks[4], ks[5], 32, action_dim)
    return (w1, b1, w2, b2, w3, b3)


def dqn_reference(x, params):
    """Plain-JAX reference (highest matmul precision to compare against f32 MXU)."""
    w1, b1, w2, b2, w3, b3 = params
    hi = jax.lax.Precision.HIGHEST
    h1 = jnp.maximum(jnp.dot(x, w1.T, precision=hi) + b1[:, 0], 0.0)
    h2 = jnp.maximum(jnp.dot(h1, w2.T, precision=hi) + b2[:, 0], 0.0)
    return jnp.dot(h2, w3.T, precision=hi) + b3[:, 0]


if __name__ == "__main__":
    key = jax.random.PRNGKey(0)
    k_params, k_x1, k_x2 = jax.random.split(key, 3)

    state_dim, action_dim = 8, 4
    params = init_params(k_params, state_dim, action_dim)

    # Tolerance accounts for MXU multi-pass f32 matmul vs XLA reference.
    ATOL = RTOL = 5e-3

    # Small online-inference batch (typical DQN action-selection call).
    x_small = jax.random.normal(k_x1, (2, state_dim), jnp.float32)
    out_small = jax.block_until_ready(dqn_forward(x_small, params))
    ref_small = dqn_reference(x_small, params)
    assert out_small.shape == (2, action_dim)
    assert jnp.allclose(out_small, ref_small, atol=ATOL, rtol=RTOL), "small-batch mismatch"

    # Replay-sized batch with a deliberately small tile to exercise the
    # multi-step grid and the ragged (masked) last tile: 1030 = 2*512 + 6.
    x_big = jax.random.normal(k_x2, (1030, state_dim), jnp.float32)
    out_big = jax.block_until_ready(dqn_forward(x_big, params, tile_b=512))
    ref_big = dqn_reference(x_big, params)
    assert out_big.shape == (1030, action_dim)
    assert jnp.allclose(out_big, ref_big, atol=ATOL, rtol=RTOL), "ragged-grid mismatch"

    # Default (performance) configuration: single grid step at replay size.
    out_def = jax.block_until_ready(dqn_forward(x_big, params))
    assert jnp.allclose(out_def, ref_big, atol=ATOL, rtol=RTOL), "default-tile mismatch"

    print("KERNEL_OK")
</pallas_src>

<mosaic_0001>
module attributes {stable_mosaic.version = 11 : i64} {
  func.func @dqn_kernel(%arg0: i32, %arg1: memref<8x2xf32, #tpu.memory_space<vmem>>, %arg2: memref<64x8xf32, #tpu.memory_space<vmem>>, %arg3: memref<64x1xf32, #tpu.memory_space<vmem>>, %arg4: memref<32x64xf32, #tpu.memory_space<vmem>>, %arg5: memref<32x1xf32, #tpu.memory_space<vmem>>, %arg6: memref<4x32xf32, #tpu.memory_space<vmem>>, %arg7: memref<4x1xf32, #tpu.memory_space<vmem>>, %arg8: memref<4x2xf32, #tpu.memory_space<vmem>>) attributes {dimension_semantics = [#tpu.dimension_semantics<parallel>], iteration_bounds = array<i64: 1>, scalar_prefetch = 0 : i64, scratch_operands = 0 : i64, tpu.core_type = #tpu.core_type<tc>, window_params = [{transform_indices = @transform_0, window_bounds = array<i64: 8, 2>}, {pipeline_mode = #tpu.pipeline_mode<synchronous>, transform_indices = @transform_1, window_bounds = array<i64: 64, 8>}, {pipeline_mode = #tpu.pipeline_mode<synchronous>, transform_indices = @transform_2, window_bounds = array<i64: 64, 1>}, {pipeline_mode = #tpu.pipeline_mode<synchronous>, transform_indices = @transform_3, window_bounds = array<i64: 32, 64>}, {pipeline_mode = #tpu.pipeline_mode<synchronous>, transform_indices = @transform_4, window_bounds = array<i64: 32, 1>}, {pipeline_mode = #tpu.pipeline_mode<synchronous>, transform_indices = @transform_5, window_bounds = array<i64: 4, 32>}, {pipeline_mode = #tpu.pipeline_mode<synchronous>, transform_indices = @transform_6, window_bounds = array<i64: 4, 1>}, {transform_indices = @transform_7, window_bounds = array<i64: 4, 2>}]} {
    %c0 = arith.constant 0 : index
    %c0_0 = arith.constant 0 : index
    %0 = vector.load %arg1[%c0, %c0_0] : memref<8x2xf32, #tpu.memory_space<vmem>>, vector<8x2xf32>
    %c0_1 = arith.constant 0 : index
    %c0_2 = arith.constant 0 : index
    %1 = vector.load %arg2[%c0_1, %c0_2] : memref<64x8xf32, #tpu.memory_space<vmem>>, vector<64x8xf32>
    %cst = arith.constant dense<0.000000e+00> : vector<64x2xf32>
    %2 = tpu.matmul %1, %0, %cst {dimension_numbers = #tpu.dot_dimension_numbers<[1], [0], [0], [1], [0, 0, 1, 1], [], []>} : vector<64x8xf32>, vector<8x2xf32>, vector<64x2xf32> -> vector<64x2xf32>
    %c0_3 = arith.constant 0 : index
    %c0_4 = arith.constant 0 : index
    %3 = vector.load %arg3[%c0_3, %c0_4] : memref<64x1xf32, #tpu.memory_space<vmem>>, vector<64x1xf32>
    %4 = vector.broadcast %3 : vector<64x1xf32> to vector<64x2xf32>
    %5 = arith.addf %2, %4 : vector<64x2xf32>
    %cst_5 = arith.constant 0.000000e+00 : f32
    %6 = vector.broadcast %cst_5 : f32 to vector<64x2xf32>
    %7 = arith.maximumf %5, %6 : vector<64x2xf32>
    %c0_6 = arith.constant 0 : index
    %c0_7 = arith.constant 0 : index
    %8 = vector.load %arg4[%c0_6, %c0_7] : memref<32x64xf32, #tpu.memory_space<vmem>>, vector<32x64xf32>
    %cst_8 = arith.constant dense<0.000000e+00> : vector<32x2xf32>
    %9 = tpu.matmul %8, %7, %cst_8 {dimension_numbers = #tpu.dot_dimension_numbers<[1], [0], [0], [1], [0, 0, 1, 1], [], []>} : vector<32x64xf32>, vector<64x2xf32>, vector<32x2xf32> -> vector<32x2xf32>
    %c0_9 = arith.constant 0 : index
    %c0_10 = arith.constant 0 : index
    %10 = vector.load %arg5[%c0_9, %c0_10] : memref<32x1xf32, #tpu.memory_space<vmem>>, vector<32x1xf32>
    %11 = vector.broadcast %10 : vector<32x1xf32> to vector<32x2xf32>
    %12 = arith.addf %9, %11 : vector<32x2xf32>
    %cst_11 = arith.constant 0.000000e+00 : f32
    %13 = vector.broadcast %cst_11 : f32 to vector<32x2xf32>
    %14 = arith.maximumf %12, %13 : vector<32x2xf32>
    %c0_12 = arith.constant 0 : index
    %c0_13 = arith.constant 0 : index
    %15 = vector.load %arg6[%c0_12, %c0_13] : memref<4x32xf32, #tpu.memory_space<vmem>>, vector<4x32xf32>
    %cst_14 = arith.constant dense<0.000000e+00> : vector<4x2xf32>
    %16 = tpu.matmul %15, %14, %cst_14 {dimension_numbers = #tpu.dot_dimension_numbers<[1], [0], [0], [1], [0, 0, 1, 1], [], []>} : vector<4x32xf32>, vector<32x2xf32>, vector<4x2xf32> -> vector<4x2xf32>
    %c0_15 = arith.constant 0 : index
    %c0_16 = arith.constant 0 : index
    %17 = vector.load %arg7[%c0_15, %c0_16] : memref<4x1xf32, #tpu.memory_space<vmem>>, vector<4x1xf32>
    %18 = vector.broadcast %17 : vector<4x1xf32> to vector<4x2xf32>
    %19 = arith.addf %16, %18 : vector<4x2xf32>
    %c0_17 = arith.constant 0 : index
    %c0_18 = arith.constant 0 : index
    %20 = vector.load %arg8[%c0_17, %c0_18] : memref<4x2xf32, #tpu.memory_space<vmem>>, vector<4x2xf32>
    tpu.vector_store %arg8[%c0_17, %c0_18], %19 {strides = array<i32>} : memref<4x2xf32, #tpu.memory_space<vmem>>, vector<4x2xf32>,
    return
  }
  func.func @transform_0(%arg0: i32) -> (i32, i32) {
    %c0_i32 = arith.constant 0 : i32
    %c0_i32_0 = arith.constant 0 : i32
    return %c0_i32, %arg0 : i32, i32
  }
  func.func @transform_1(%arg0: i32) -> (i32, i32) {
    %c0_i32 = arith.constant 0 : i32
    %c0_i32_0 = arith.constant 0 : i32
    %c0_i32_1 = arith.constant 0 : i32
    return %c0_i32, %c0_i32_0 : i32, i32
  }
  func.func @transform_2(%arg0: i32) -> (i32, i32) {
    %c0_i32 = arith.constant 0 : i32
    %c0_i32_0 = arith.constant 0 : i32
    %c0_i32_1 = arith.constant 0 : i32
    return %c0_i32, %c0_i32_0 : i32, i32
  }
  func.func @transform_3(%arg0: i32) -> (i32, i32) {
    %c0_i32 = arith.constant 0 : i32
    %c0_i32_0 = arith.constant 0 : i32
    %c0_i32_1 = arith.constant 0 : i32
    return %c0_i32, %c0_i32_0 : i32, i32
  }
  func.func @transform_4(%arg0: i32) -> (i32, i32) {
    %c0_i32 = arith.constant 0 : i32
    %c0_i32_0 = arith.constant 0 : i32
    %c0_i32_1 = arith.constant 0 : i32
    return %c0_i32, %c0_i32_0 : i32, i32
  }
  func.func @transform_5(%arg0: i32) -> (i32, i32) {
    %c0_i32 = arith.constant 0 : i32
    %c0_i32_0 = arith.constant 0 : i32
    %c0_i32_1 = arith.constant 0 : i32
    return %c0_i32, %c0_i32_0 : i32, i32
  }
  func.func @transform_6(%arg0: i32) -> (i32, i32) {
    %c0_i32 = arith.constant 0 : i32
    %c0_i32_0 = arith.constant 0 : i32
    %c0_i32_1 = arith.constant 0 : i32
    return %c0_i32, %c0_i32_0 : i32, i32
  }
  func.func @transform_7(%arg0: i32) -> (i32, i32) {
    %c0_i32 = arith.constant 0 : i32
    %c0_i32_0 = arith.constant 0 : i32
    return %c0_i32, %arg0 : i32, i32
  }
}

</mosaic_0001>

<bundles_post_ra>
// kernel: tpu_custom_call.1
= control target key start
LH: loop header
LB: loop body
LE: loop exit
PB: predicated region body
PF: predicated region fallthrough
CT: control target
= control target key end

     0   :  { %vm83_vm0 = vcmask 64512   ;;  %v294_v2 = vmov 0   ;;  %vm185_vm1 = vcmask 523264   ;;  %vm238_vm2 = vcmask 261120   ;;  %s427_s0 = inlined_call_operand.vmem [shape: f32[8,2], index: 0, kind: input, shape index: {}]   ;;  %s428_s1 = inlined_call_operand.vmem [shape: f32[64,8], index: 1, kind: input, shape index: {}]   ;;  %s429_s2 = inlined_call_operand.vmem [shape: f32[64,1], index: 2, kind: input, shape index: {}]   ;;  %s430_s4 = inlined_call_operand.vmem [shape: f32[32,1], index: 4, kind: input, shape index: {}]   ;;  %s431_s6 = inlined_call_operand.vmem [shape: f32[4,1], index: 6, kind: input, shape index: {}]   ;;  %s432_s3 = inlined_call_operand.vmem [shape: f32[32,64], index: 3, kind: input, shape index: {}]   ;;  %s433_s5 = inlined_call_operand.vmem [shape: f32[4,32], index: 5, kind: input, shape index: {}]   ;;  %s434_s7 = inlined_call_operand.vmem [shape: f32[4,2], index: 7, kind: output, shape index: {}]  }
   0x1   :  { %v26_v0 = vld [vmem:[%s427_s0] sm:$0xff]  ;;  %291 = vset.pattern.permute.xlu0 %v294_v2  ;;  %v42_v3 = vld [vmem:[%s429_s2 + $0x38] sm:$0xff]  ;;  %292 = vset.pattern.permute.xlu1 %v294_v2  ;;  %v40_v5 = vld [vmem:[%s429_s2 + $0x28] sm:$0xff]  ;;  %vm262_vm3 = vcmask 11264  }
   0x2   :  { %v31_v1 = vld [vmem:[%s428_s1 + $0x20] sm:$0xff]  ;;  %281 = vmatpush.msra.mxu3 %v26_v0  ;;  %80 = vperm.xlu0 %291, %v42_v3   ;;  %v41_v6 = vld [vmem:[%s429_s2 + $0x30] sm:$0xff]  ;;  %v38_v7 = vld [vmem:[%s429_s2 + $0x18] sm:$0xff] }
   0x3   :  { %v27_v4 = vld [vmem:[%s428_s1] sm:$0xff]  ;;  %272 = vmatmul.msk.f32.vlgmr.msra.gmra.mxu3 %vm83_vm0, %v31_v1  ;;  %123 = vmatpush.msra.mxu0 %v26_v0  ;;  %v32_v8 = vld [vmem:[%s428_s1 + $0x28] sm:$0xff]  ;;  %v37_v11 = vld [vmem:[%s429_s2 + $0x10] sm:$0xff] }
   0x4   :  { %268 = vmatmul.msk.f32.vlgmr.msra.gmra.mxu0 %vm83_vm0, %v27_v4  ;;  %70 = vperm.xlu1 %292, %v40_v5   ;;  %v28_v9 = vld [vmem:[%s428_s1 + $0x8] sm:$0xff]  ;;  %v39_v10 = vld [vmem:[%s429_s2 + $0x20] sm:$0xff]  ;;  %v33_v13 = vld [vmem:[%s428_s1 + $0x30] sm:$0xff] }
   0x5   :  { %293 = vset.pattern.permute.xlu2 %v294_v2  ;;  %v36_v12 = vld [vmem:[%s429_s2 + $0x8] sm:$0xff]  ;;  %v29_v14 = vld [vmem:[%s428_s1 + $0x10] sm:$0xff]  ;;  %v35_v15 = vld [vmem:[%s429_s2] sm:$0xff] }
   0x6   :  { %60 = vperm.xlu2 %293, %v38_v7   ;;  %v164_v16 = vld [vmem:[%s430_s4 + $0x18] sm:$0xff]  ;;  %v163_v17 = vld [vmem:[%s430_s4 + $0x10] sm:$0xff]  ;;  %v162_v20 = vld [vmem:[%s430_s4 + $0x8] sm:$0xff] }
   0x7   :  { %v34_v18 = vld [vmem:[%s428_s1 + $0x38] sm:$0xff]  ;;  %v161_v21 = vld [vmem:[%s430_s4] sm:$0xff]  ;;  %v158_v57 = vld [vmem:[%s432_s3 + $0x8] sm:$0xff] }
   0x8   :  { %v30_v19 = vld [vmem:[%s428_s1 + $0x18] sm:$0xff]  ;;  %v232_v22 = vld [vmem:[%s431_s6] sm:$0xf]  ;;  %v159_v58 = vld [vmem:[%s432_s3 + $0x10] sm:$0xff] }
   0x9   :  { %v157_v55 = vld [vmem:[%s432_s3] sm:$0xff]  ;;  %v160_v56 = vld [vmem:[%s432_s3 + $0x18] sm:$0xff] }
   0xa   :  { %75 = vperm.xlu0 %291, %v41_v6  }
   0xb   :  { %273 = vmatmul.msk.f32.gmra.mxu3 %vm83_vm0, %v32_v8 }
   0xc   :  { %269 = vmatmul.msk.f32.gmra.mxu0 %vm83_vm0, %v28_v9  ;;  %65 = vperm.xlu1 %292, %v39_v10  }
   0xe   :  { %55 = vperm.xlu2 %293, %v37_v11   ;;  %v231_v11 = vld [vmem:[%s433_s5] sm:$0xf] }
  0x12   :  { %50 = vperm.xlu0 %291, %v36_v12  }
  0x13   :  { %274 = vmatmul.msk.f32.gmra.mxu3 %vm83_vm0, %v33_v13 }
  0x14   :  { %270 = vmatmul.msk.f32.gmra.mxu0 %vm83_vm0, %v29_v14  ;;  %45 = vperm.xlu1 %292, %v35_v15  }
  0x16   :  { %182 = vperm.xlu2 %293, %v164_v16  }
  0x1a   :  { %177 = vperm.xlu0 %291, %v163_v17  }
  0x1b   :  { %275 = vmatmul.msk.f32.gmra.mxu3 %vm83_vm0, %v34_v18 }
  0x1c   :  { %271 = vmatmul.msk.f32.gmra.mxu0 %vm83_vm0, %v30_v19  ;;  %172 = vperm.xlu1 %292, %v162_v20  }
  0x1e   :  { %167 = vperm.xlu2 %293, %v161_v21  }
  0x22   :  { %235 = vperm.xlu0 %291, %v232_v22  }
  0x60   :  { %v61_v31 = vpop.permute.xlu2 %60 }
  0x68   :  { %v56_v44 = vpop.permute.xlu2 %55 }
  0x70   :  { %v183_v60 = vpop.permute.xlu2 %182 }
  0x74   :  { %v81_v27 = vpop.permute.xlu0 %80 }
  0x76   :  { %v71_v28 = vpop.permute.xlu1 %70 }
  0x78   :  { %v168_v6 = vpop.permute.xlu2 %167 }
  0x7c   :  { %v76_v32 = vpop.permute.xlu0 %75 }
  0x7e   :  { %v66_v33 = vpop.permute.xlu1 %65 }
  0x81   :  { %v125_v23 = vpop.f32.mrf.mxu0 }
  0x84   :  { %v51_v47 = vpop.permute.xlu0 %50 }
  0x86   :  { %v137_v24 = vpop.f32.mrf.mxu3  ;;  %v46_v48 = vpop.permute.xlu1 %45 }
  0x87   :  { %v138_v40 = vadd.f32 %v137_v24, %v66_v33  ;;  %v126_v51 = vadd.f32 %v125_v23, %v46_v48 }
  0x89   :  { %v128_v26 = vpop.f32.mrf.mxu0  ;;  %v153_v45 = vmax.f32 %v138_v40, 0.0  ;;  %v149_v54 = vmax.f32 %v126_v51, 0.0 }
  0x8a   :  { %v129_v49 = vadd.f32 %v128_v26, %v51_v47 }
  0x8c   :  { %v150_v53 = vmax.f32 %v129_v49, 0.0  ;;  %v178_v1 = vpop.permute.xlu0 %177 }
  0x8e   :  { %v140_v25 = vpop.f32.mrf.mxu3  ;;  %v173_v2 = vpop.permute.xlu1 %172 }
  0x8f   :  { %v141_v37 = vadd.f32 %v140_v25, %v71_v28 }
  0x91   :  { %v131_v30 = vpop.f32.mrf.mxu0  ;;  %v154_v42 = vmax.f32 %v141_v37, 0.0 }
  0x92   :  { %v132_v46 = vadd.f32 %v131_v30, %v56_v44 }
  0x94   :  { %v151_v52 = vmax.f32 %v132_v46, 0.0  ;;  %v236_v12 = vpop.permute.xlu0 %235 }
  0x96   :  { %v143_v29 = vpop.f32.mrf.mxu3 }
  0x97   :  { %v144_v35 = vadd.f32 %v143_v29, %v76_v32 }
  0x99   :  { %v134_v39 = vpop.f32.mrf.mxu0  ;;  %v155_v41 = vmax.f32 %v144_v35, 0.0 }
  0x9a   :  { %v135_v43 = vadd.f32 %v134_v39, %v61_v31 }
  0x9c   :  { %v152_v50 = vmax.f32 %v135_v43, 0.0 }
  0x9e   :  { %v146_v34 = vpop.f32.mrf.mxu3 }
  0x9f   :  { %v147_v36 = vadd.f32 %v146_v34, %v81_v27 }
  0xa1   :  { %v156_v38 = vmax.f32 %v147_v36, 0.0 }
  0xa3   :  { %206 = vmatpush.msra.mxu1 %v156_v38  ;;  %282 = vmatpush.msra.mxu2 %v156_v38 }
  0xa5   :  { %207 = vmatpush.msra.mxu1 %v155_v41  ;;  %283 = vmatpush.msra.mxu2 %v155_v41 }
  0xa7   :  { %208 = vmatpush.msra.mxu1 %v154_v42  ;;  %284 = vmatpush.msra.mxu2 %v154_v42 }
  0xa9   :  { %209 = vmatpush.msra.mxu1 %v153_v45  ;;  %285 = vmatpush.msra.mxu2 %v153_v45 }
  0xab   :  { %210 = vmatpush.msra.mxu1 %v152_v50  ;;  %286 = vmatpush.msra.mxu2 %v152_v50 }
  0xad   :  { %211 = vmatpush.msra.mxu1 %v151_v52  ;;  %287 = vmatpush.msra.mxu2 %v151_v52 }
  0xaf   :  { %212 = vmatpush.msra.mxu1 %v150_v53  ;;  %288 = vmatpush.msra.mxu2 %v150_v53 }
  0xb1   :  { %213 = vmatpush.msra.mxu1 %v149_v54  ;;  %289 = vmatpush.msra.mxu2 %v149_v54 }
  0xb2   :  { %276 = vmatmul.msk.f32.vlgmr.msra.gmra.mxu1 %vm185_vm1, %v157_v55  ;;  %279 = vmatmul.msk.f32.vlgmr.msra.gmra.mxu2 %vm185_vm1, %v160_v56 }
  0xba   :  { %277 = vmatmul.msk.f32.gmra.mxu1 %vm185_vm1, %v158_v57 }
  0xc2   :  { %278 = vmatmul.msk.f32.gmra.mxu1 %vm185_vm1, %v159_v58 }
 0x12f   :  { %v215_v59 = vpop.f32.mrf.mxu1 }
 0x130   :  { %v216_v7 = vadd.f32 %v215_v59, %v168_v6 }
 0x132   :  { %v227_v10 = vmax.f32 %v216_v7, 0.0 }
 0x135   :  { %v224_v61 = vpop.f32.mrf.mxu2 }
 0x136   :  { %v225_v62 = vadd.f32 %v224_v61, %v183_v60 }
 0x137   :  { %v218_v63 = vpop.f32.mrf.mxu1 }
 0x138   :  { %v230_v0 = vmax.f32 %v225_v62, 0.0  ;;  %v219_v4 = vadd.f32 %v218_v63, %v173_v2 }
 0x13a   :  { %254 = vmatpush.msrb.mxu2 %v230_v0  ;;  %v228_v9 = vmax.f32 %v219_v4, 0.0 }
 0x13f   :  { %v221_v3 = vpop.f32.mrf.mxu1 }
 0x140   :  { %v222_v5 = vadd.f32 %v221_v3, %v178_v1 }
 0x142   :  { %v229_v8 = vmax.f32 %v222_v5, 0.0 }
 0x144   :  { %255 = vmatpush.msrb.mxu2 %v229_v8 }
 0x146   :  { %256 = vmatpush.msrb.mxu2 %v228_v9 }
 0x148   :  { %257 = vmatpush.msrb.mxu2 %v227_v10 }
 0x149   :  { %280 = vmatmul.msk.f32.vlgmr.msrb.gmra.mxu2 %vm238_vm2, %v231_v11 }
 0x1cc   :  { %v259_v13 = vpop.f32.mrf.mxu2 }
 0x1cd   :  { %v260_v14 = vadd.f32 %v259_v13, %v236_v12 }
 0x1cf   :  { %263 = vst.msk [vmem:[%s434_s7] sm:$0xf] %vm262_vm3, %v260_v14 }

</bundles_post_ra>
